<compile_context>
chip_gen: v7x
topology: tpu7x:2x2x1
jax: 0.10.0
libtpu: 0.0.40
codegen_flags: <defaults>
</compile_context>

<pallas_src>
import jax
import jax.numpy as jnp
from jax.experimental import pallas as pl
from jax.experimental.pallas import tpu as pltpu


_MXU_MIN_C = 128          # below this, use the VPU weighted-sum path
_MAX_TILE_L = 8192        # lane-tile upper bound (multiple of 128)
_X_TILE_BUDGET_BYTES = 6 * 1024 * 1024   # double-buffered input tile budget


def _choose_tile_l(L, C, itemsize):
    """Largest lane tile (multiple of 128) fitting the VMEM budget."""
    max_tile = _X_TILE_BUDGET_BYTES // max(1, 2 * C * itemsize)
    tile = min(_MAX_TILE_L, max_tile)
    tile = max(128, (tile // 128) * 128)
    l_pad = pl.cdiv(L, 128) * 128
    return min(tile, max(128, l_pad))


def _mask_head_kernel_vpu(w_ref, b_ref, x_ref, o_ref):
    # w_ref: (C,)  SMEM scalars (f32)
    # b_ref: (1,)  SMEM scalar  (f32)
    # x_ref: (C, TILE_L) VMEM (native dtype)
    # o_ref: (1, TILE_L) VMEM (f32)
    C = x_ref.shape[0]
    x = x_ref[...].astype(jnp.float32)
    acc = w_ref[0] * x[0:1, :]
    for c in range(1, C):          # C is static; short unrolled FMA chain
        acc = acc + w_ref[c] * x[c:c + 1, :]
    o_ref[...] = (acc + b_ref[0]).astype(o_ref.dtype)


def _mask_head_kernel_mxu(w_ref, b_ref, x_ref, o_ref):
    # w_ref: (1, C) VMEM; b_ref: (1,) SMEM; x_ref: (C, TILE_L); o_ref: (1, TILE_L)
    acc = jnp.dot(w_ref[...], x_ref[...], preferred_element_type=jnp.float32)
    o_ref[...] = (acc + b_ref[0]).astype(o_ref.dtype)


def mask_head_1x1(x_bcl, weight, bias):
    """1x1 conv (C -> 1 channel) over a (B, C, L) tensor.

    x_bcl:  (B, C, L) any float dtype (kept native; f32 accumulation)
    weight: (C,) float
    bias:   (1,) float
    returns (B, 1, L) float32
    """
    B, C, L = x_bcl.shape
    itemsize = jnp.dtype(x_bcl.dtype).itemsize
    tile_l = _choose_tile_l(L, C, itemsize)
    grid = (B, pl.cdiv(L, tile_l))

    b_arg = bias.reshape(1).astype(jnp.float32)

    if C >= _MXU_MIN_C:
        kernel = _mask_head_kernel_mxu
        w_arg = weight.reshape(1, C).astype(x_bcl.dtype)
        w_spec = pl.BlockSpec((1, C), lambda b, i: (0, 0))
    else:
        kernel = _mask_head_kernel_vpu
        w_arg = weight.reshape(C).astype(jnp.float32)
        w_spec = pl.BlockSpec(memory_space=pltpu.MemorySpace.SMEM)

    out = pl.pallas_call(
        kernel,
        out_shape=jax.ShapeDtypeStruct((B, 1, L), jnp.float32),
        grid_spec=pltpu.PrefetchScalarGridSpec(
            num_scalar_prefetch=0,
            grid=grid,
            in_specs=[
                w_spec,                                                # weight
                pl.BlockSpec(memory_space=pltpu.MemorySpace.SMEM),     # bias
                # Leading batch dim squeezed out; kernel sees (C, TILE_L).
                pl.BlockSpec((None, C, tile_l), lambda b, i: (b, 0, i)),
            ],
            out_specs=pl.BlockSpec((None, 1, tile_l), lambda b, i: (b, 0, i)),
        ),
        compiler_params=pltpu.CompilerParams(
            # Both grid axes independent -> megacore sharding on v7x.
            dimension_semantics=("parallel", "parallel"),
            vmem_limit_bytes=32 * 1024 * 1024,
        ),
        cost_estimate=pl.CostEstimate(
            flops=2 * B * C * L,
            transcendentals=0,
            bytes_accessed=B * C * L * itemsize + B * L * 4,
        ),
    )(w_arg, b_arg, x_bcl)
    return out


def init_params(key, scale_dim):
    """Deterministic init of Conv2d(scale_dim, 1, kernel_size=1) params."""
    kw, kb = jax.random.split(key)
    fan_in = scale_dim
    bound = 1.0 / (fan_in ** 0.5)
    weight = jax.random.uniform(kw, (1, scale_dim, 1, 1), jnp.float32,
                                minval=-bound, maxval=bound)
    bias = jax.random.uniform(kb, (1,), jnp.float32, minval=-bound, maxval=bound)
    return {"weight": weight, "bias": bias}


def video2d_imageconv_mask_decoder(multiscales, params, classified_scale):
    """Forward pass equivalent to Video2D_ImageConv_MaskDecoder.forward."""
    x = multiscales[classified_scale]            # (B, C, T, H, W)
    B, C, T, H, W = x.shape
    L = T * H * W

    # 1x1 conv over channels is order-invariant in (t,h,w): flatten without
    # any transpose (pure reshape, no HBM pass), keep the native dtype.
    x_bcl = x.reshape(B, C, L)

    w = params["weight"].reshape(C)
    b = params["bias"].reshape(1)

    masks = mask_head_1x1(x_bcl, w, b)           # (B, 1, L) float32

    # (B, 1, T*H*W) and (B, T, 1, H, W) share the same flat ordering
    # (the moved axis has size 1), so this reshape is also free.
    pred_masks = masks.reshape(B, T, 1, H, W)

    # pred_classes: torch.tensor([1, 0])[None, None, :].repeat(B*T, 1, 1)
    # rearranged '(b t) nq c -> b t nq c'  -> (B, T, 1, 2)
    pred_classes = jnp.broadcast_to(
        jnp.array([1, 0], dtype=jnp.int32)[None, None, None, :], (B, T, 1, 2))

    return {"pred_masks": pred_masks, "pred_classes": pred_classes}

# TODO(synk): compute_loss / compute_loss_two_outputs are training-time losses
# (interpolate + BCE/dice) and are not part of the forward pass; not ported.


if __name__ == "__main__":
    key = jax.random.PRNGKey(0)
    k_x, k_p = jax.random.split(key)

    # Small shapes consistent with the module: batch=2, scale_dim=4,
    # nf (frames)=4, spatial=16x16.
    B, C, T, H, W = 2, 4, 4, 16, 16
    classified_scale = "res2"

    x = jax.random.normal(k_x, (B, C, T, H, W), dtype=jnp.float32)
    multiscales = {classified_scale: x}

    params = init_params(k_p, scale_dim=C)

    out = video2d_imageconv_mask_decoder(multiscales, params, classified_scale)
    pred_masks = jax.block_until_ready(out["pred_masks"])
    pred_classes = jax.block_until_ready(out["pred_classes"])

    # Pure-JAX reference for the 1x1 conv, to validate the Pallas path.
    ref = (jnp.einsum("bcthw,c->bthw", x, params["weight"].reshape(C))
           + params["bias"][0])
    ref = ref.reshape(B, T, 1, H, W)

    assert pred_masks.shape == (B, T, 1, H, W)
    assert pred_classes.shape == (B, T, 1, 2)
    assert jnp.allclose(pred_masks, ref, atol=1e-5, rtol=1e-5)
    assert bool(jnp.all(pred_classes == jnp.array([1, 0], dtype=jnp.int32)))

    print("KERNEL_OK")
</pallas_src>

<mosaic_0001>
module attributes {stable_mosaic.version = 11 : i64} {
  func.func @_mask_head_kernel_vpu(%arg0: i32, %arg1: i32, %arg2: memref<4xf32, #tpu.memory_space<smem>>, %arg3: memref<1xf32, #tpu.memory_space<smem>>, %arg4: memref<1x4x1024xf32, #tpu.memory_space<vmem>>, %arg5: memref<1x1x1024xf32, #tpu.memory_space<vmem>>) attributes {dimension_semantics = [#tpu.dimension_semantics<parallel>, #tpu.dimension_semantics<parallel>], iteration_bounds = array<i64: 2, 1>, scalar_prefetch = 0 : i64, scratch_operands = 0 : i64, tpu.core_type = #tpu.core_type<tc>, window_params = [{transform_indices = @transform_0, window_bounds = array<i64: 4>}, {transform_indices = @transform_1, window_bounds = array<i64: 1>}, {transform_indices = @transform_2, window_bounds = array<i64: 1, 4, 1024>}, {transform_indices = @transform_3, window_bounds = array<i64: 1, 1, 1024>}]} {
    %c0 = arith.constant 0 : index
    %c0_0 = arith.constant 0 : index
    %c0_1 = arith.constant 0 : index
    %0 = vector.load %arg4[%c0, %c0_0, %c0_1] : memref<1x4x1024xf32, #tpu.memory_space<vmem>>, vector<1x4x1024xf32>
    %1 = vector.shape_cast %0 : vector<1x4x1024xf32> to vector<4x1024xf32>
    %c0_2 = arith.constant 0 : index
    %2 = memref.load %arg2[%c0_2] : memref<4xf32, #tpu.memory_space<smem>>
    %3 = vector.extract_strided_slice %1 {offsets = [0, 0], sizes = [1, 1024], strides = [1, 1]} : vector<4x1024xf32> to vector<1x1024xf32>
    %4 = vector.broadcast %2 : f32 to vector<1x1024xf32>
    %5 = arith.mulf %4, %3 : vector<1x1024xf32>
    %c1 = arith.constant 1 : index
    %6 = memref.load %arg2[%c1] : memref<4xf32, #tpu.memory_space<smem>>
    %7 = vector.extract_strided_slice %1 {offsets = [1, 0], sizes = [1, 1024], strides = [1, 1]} : vector<4x1024xf32> to vector<1x1024xf32>
    %8 = vector.broadcast %6 : f32 to vector<1x1024xf32>
    %9 = arith.mulf %8, %7 : vector<1x1024xf32>
    %10 = arith.addf %5, %9 : vector<1x1024xf32>
    %c2 = arith.constant 2 : index
    %11 = memref.load %arg2[%c2] : memref<4xf32, #tpu.memory_space<smem>>
    %12 = vector.extract_strided_slice %1 {offsets = [2, 0], sizes = [1, 1024], strides = [1, 1]} : vector<4x1024xf32> to vector<1x1024xf32>
    %13 = vector.broadcast %11 : f32 to vector<1x1024xf32>
    %14 = arith.mulf %13, %12 : vector<1x1024xf32>
    %15 = arith.addf %10, %14 : vector<1x1024xf32>
    %c3 = arith.constant 3 : index
    %16 = memref.load %arg2[%c3] : memref<4xf32, #tpu.memory_space<smem>>
    %17 = vector.extract_strided_slice %1 {offsets = [3, 0], sizes = [1, 1024], strides = [1, 1]} : vector<4x1024xf32> to vector<1x1024xf32>
    %18 = vector.broadcast %16 : f32 to vector<1x1024xf32>
    %19 = arith.mulf %18, %17 : vector<1x1024xf32>
    %20 = arith.addf %15, %19 : vector<1x1024xf32>
    %c0_3 = arith.constant 0 : index
    %21 = memref.load %arg3[%c0_3] : memref<1xf32, #tpu.memory_space<smem>>
    %22 = vector.broadcast %21 : f32 to vector<1x1024xf32>
    %23 = arith.addf %20, %22 : vector<1x1024xf32>
    %c0_4 = arith.constant 0 : index
    %c0_5 = arith.constant 0 : index
    %c0_6 = arith.constant 0 : index
    %24 = vector.load %arg5[%c0_4, %c0_5, %c0_6] : memref<1x1x1024xf32, #tpu.memory_space<vmem>>, vector<1x1x1024xf32>
    %25 = vector.shape_cast %24 : vector<1x1x1024xf32> to vector<1x1024xf32>
    %26 = vector.shape_cast %23 : vector<1x1024xf32> to vector<1x1x1024xf32>
    tpu.vector_store %arg5[%c0_4, %c0_5, %c0_6], %26 {strides = array<i32>} : memref<1x1x1024xf32, #tpu.memory_space<vmem>>, vector<1x1x1024xf32>,
    return
  }
  func.func @transform_0(%arg0: i32, %arg1: i32) -> i32 {
    %c0_i32 = arith.constant 0 : i32
    %c0_i32_0 = arith.constant 0 : i32
    return %c0_i32 : i32
  }
  func.func @transform_1(%arg0: i32, %arg1: i32) -> i32 {
    %c0_i32 = arith.constant 0 : i32
    %c0_i32_0 = arith.constant 0 : i32
    return %c0_i32 : i32
  }
  func.func @transform_2(%arg0: i32, %arg1: i32) -> (i32, i32, i32) {
    %c0_i32 = arith.constant 0 : i32
    %c0_i32_0 = arith.constant 0 : i32
    return %arg0, %c0_i32, %arg1 : i32, i32, i32
  }
  func.func @transform_3(%arg0: i32, %arg1: i32) -> (i32, i32, i32) {
    %c0_i32 = arith.constant 0 : i32
    %c0_i32_0 = arith.constant 0 : i32
    return %arg0, %c0_i32, %arg1 : i32, i32, i32
  }
}

</mosaic_0001>

<bundles_post_ra>
// kernel: tpu_custom_call.1
= control target key start
LH: loop header
LB: loop body
LE: loop exit
PB: predicated region body
PF: predicated region fallthrough
CT: control target
= control target key end

     0   :  { %s948_s0 = inlined_call_operand.vmem [shape: f32[4], index: 0, kind: input, shape index: {}]   ;;  %s949_s1 = inlined_call_operand.<no memory space> [shape: f32[1], index: 1, kind: input, shape index: {}]   ;;  %s950_s2 = inlined_call_operand.hbm [shape: f32[2,4,1024], index: 2, kind: input, shape index: {}]   ;;  %s951_s3 = inlined_call_operand.hbm [shape: f32[2,1,1024], index: 3, kind: output, shape index: {}]  }
   0x1   :  { %8 = sst [smem:[#allocation2]] %s949_s1 }
   0x2   :  { %9 = vsyncpa [#allocation6], 0 }
   0x3   :  { %10 = vsyncpa [#allocation4], 0 }
   0x4   :  { %12 = vsyncpa [#allocation4 + $0x1], 0 }
   0x5   :  { %13 = vsyncpa [#allocation5], 0 }
   0x6   :  { %15 = vsyncpa [#allocation5 + $0x1], 0  ;;  %s748_s14 = smov 0   ;;  %s750_s15 = smov 0  }
   0x7   :  { %s752_s16 = smov 0   ;;  %s754_s17 = smov 0  }
   0x8   :  { %s756_s18 = smov 0   ;;  %s758_s19 = smov 0  }
   0x9 LB: > { %s480_s1 = sadd.s32 4294967295, %s719_s19   ;;  %s481_s20 = sadd.s32 4294967294, %s719_s19   ;;  %s719_s19 = sphi %s758_s19, %s21_s19   ;;  %s715_s18 = sphi %s756_s18, %s973_s18   ;;  %s711_s17 = sphi %s754_s17, %s972_s17   ;;  %s707_s16 = sphi %s752_s16, %s971_s16   ;;  %s703_s15 = sphi %s750_s15, %s970_s15   ;;  %s699_s14 = sphi %s748_s14, %s969_s14  }
   0xa   : > { %p97_p0 = scmp.ne.s32.totalorder %s703_s15, %s699_s14  ;;  %p782_p1 = scmp.eq.s32.totalorder %s480_s1, 0 }
   0xb   : > { %p786_p2 = scmp.eq.s32.totalorder %s480_s1, 1  ;;  %p129_p3 = scmp.eq.s32.totalorder %s481_s20, 1 }
   0xc   : > { %s956_s21 = scalar_select %p782_p1, 1, 0 }
   0xd   : > { %p792_p4 = por %p782_p1, %p97_p0  ;;  %p482_p5 = scmp.ge.s32.totalorder %s719_s19, 1 }
   0xe   : > { %p797_p6 = por %p129_p3, %p97_p0  ;;  %p136_p7 = scmp.lt.s32.totalorder %s719_s19, 3 }
   0xf   : > { %s958_s23 = scalar_select %p792_p4, 1, 0 }
  0x10   : > { %s959_s24 = scalar_select %p797_p6, 1, 0 }
  0x11   : > { %s149_s27 = sshll.u32 %s948_s0, 4  ;;  %p805_p8 = pnand %p482_p5, %p136_p7  ;;  %s150_s27 = int_to_ptr.vmem [resolvable:$true] %s149_s27 }
  0x12   : > { %s33_s30 = sadd.s32 1, %s715_s18  ;;  %s84_s4 = sadd.s32 1, %s707_s16 }
  0x13   : > { %p522_p10 = pneg %p805_p8  ;;  %p35_p12 = scmp.ge.s32.totalorder %s33_s30, 2 }
  0x14   : > { %s588_s5 = scalar_lea.vmem %s150_s27, 16  ;;  %p596_p7 = scmp.lt.s32.totalorder %s150_s27, %s150_s27 }
  0x15   : > { %p814_p11 = pnand %p522_p10, %p782_p1  ;;  %p589_p13 = scmp.ne.s32.totalorder %s150_s27, %s588_s5 }
  0x16   : > { %p597_p6 = scmp.lt.s32.totalorder %s588_s5, %s588_s5 }
  0x17   : > { %p590_p0 = pneg %p814_p11 }
  0x18   : > { %p598_p9 = por %p597_p6, %p596_p7 }
  0x19   : > { %p591_p3 = pnand %p590_p0, %p589_p13 }
  0x1b   : > { %p592_p5 = pneg %p591_p3 }
  0x1d   : > { %p599_p4 = pnand %p598_p9, %p592_p5 }
  0x1f   : > { %602 = shalt.err (!%p599_p4)
}
  0x20   : > { %s721_s6 = smov [#allocation3]   ;;  %s975_s30 = smov (%p35_p12, %s33_s30), 0 }
  0x21   : > { %525 = dma.vmem_to_smem (!%p814_p11), %s150_s27, 16, %s721_s6, [#allocation6]  }
  0x22   : > { %p91_p10 = scmp.ne.s32.totalorder %s707_s16, %s703_s15  ;;  %p92_p6 = scmp.eq.s32.totalorder %s719_s19, 0 }
  0x23   : > { %s79_s7 = ssub.s32 %s715_s18, %s975_s30  ;;  %p535_p4 = scmp.lt.s32.totalorder %s719_s19, 2 }
  0x24   : > { %p82_p9 = scmp.eq.s32.totalorder %s79_s7, 0  ;;  %p93_p13 = por %p92_p6, %p91_p10 }
  0x25   : > { %p834_p0 = por %p786_p2, %p91_p10  ;;  %s163_s9 = sand.u32 1, %s707_s16  }
  0x26   : > { %s840_s10 = scalar_select %p82_p9, %s707_s16, %s84_s4  }
  0x27   : > { %s962_s8 = scalar_select %p834_p0, 1, 0 }
  0x28   : > { %s485_s11 = sshll.u32 %s163_s9, 5  ;;  %s512_s12 = sshll.u32 %s715_s18, 9 }
  0x29   : > { %s846_s20 = scalar_lea.hbm %s950_s2, %s512_s12  ;;  %s167_s25 = scalar_lea.vmem [#allocation7], %s485_s11 }
  0x2a   : > { %s177_s22 = sshll.u32 %s167_s25, 4  ;;  %p850_p2 = pnand %p535_p4, %p93_p13  ;;  %s848_s22 = int_to_ptr.vmem [resolvable:$true] %s177_s22 }
  0x2b   : > { %s164_s27 = scalar_lea.sflag [#allocation4], %s163_s9  ;;  %s603_s29 = scalar_lea.hbm %s846_s20, 512 }
  0x2c   : > { %p604_p11 = scmp.ne.s32.totalorder %s846_s20, %s603_s29  ;;  %p605_p12 = pneg %p850_p2 }
  0x2d   : > { %s608_s6 = scalar_lea.hbm %s950_s2, 1024  ;;  %p609_p7 = scmp.lt.u32.totalorder %s846_s20, %s950_s2 }
  0x2e   : > { %p606_p3 = pnand %p605_p12, %p604_p11  ;;  %p610_p10 = scmp.lt.u32.totalorder %s608_s6, %s603_s29 }
  0x2f   : > { %p612_p4 = scmp.lt.u32.totalorder %s603_s29, %s846_s20 }
  0x30   : > { %p607_p5 = pneg %p606_p3  ;;  %p611_p6 = por %p610_p10, %p609_p7 }
  0x32   : > { %p613_p9 = por %p612_p4, %p611_p6 }
  0x34   : > { %p614_p13 = pnand %p613_p9, %p607_p5 }
  0x36   : > { %617 = shalt.err (!%p614_p13)
}
  0x37   : > { %s618_s9 = scalar_lea.vmem %s848_s22, 512  ;;  %s722_s12 = smov [#allocation7]  }
  0x38   : > { %p619_p11 = scmp.ne.s32.totalorder %s848_s22, %s618_s9  ;;  %s623_s13 = sshll.u32 %s722_s12, 4  ;;  %s624_s13 = int_to_ptr.vmem [resolvable:$false] %s623_s13 }
  0x39   : > { %s625_s1 = scalar_lea.vmem %s624_s13, 1024  ;;  %p626_p1 = scmp.lt.s32.totalorder %s848_s22, %s624_s13 }
  0x3a   : > { %p621_p3 = pnand %p619_p11, %p605_p12  ;;  %p627_p7 = scmp.lt.s32.totalorder %s625_s1, %s618_s9 }
  0x3c   : > { %p622_p0 = pneg %p621_p3  ;;  %p628_p10 = por %p627_p7, %p626_p1 }
  0x3e   : > { %p629_p6 = pnand %p628_p10, %p622_p0 }
  0x40   : > { %632 = shalt.err (!%p629_p6)
}
  0x41   : > { %529 = dma.hbm_to_vmem [thread:$0]  (!%p850_p2), %s846_s20, 512, %s848_s22, %s164_s27  }
  0x42   : > { %186 = sbr.rel (%p805_p8) target bundleno = 124 (0x7c), region = 32  ;;  %p964_p12 = scmp.ne.s32.totalorder (!%p805_p8), %s956_s21, 0 }
  0x49   : > { %686 = dma.done.wait (%p964_p12), [#allocation6], 16  }
  0x4a   : > { %688 = vsyncadd (%p964_p12), [#allocation6], 4294967280  ;;  %s886_s25 = sand.u32 1, %s703_s15   ;;  %p965_p1 = scmp.ne.s32.totalorder %s958_s23, 0 }
  0x4b   : > { %s490_s29 = sshll.u32 %s886_s25, 5  ;;  %s193_s26 = scalar_lea.sflag [#allocation4], %s886_s25 }
  0x4c   : > { %s196_s4 = scalar_lea.vmem [#allocation7], %s490_s29 }
  0x4d   : > { %690 = dma.done.wait (%p965_p1), %s193_s26, 512  }
  0x4e   : > { %692 = vsyncadd (%p965_p1), %s193_s26, 4294966784 }
  0x4f   : > { %201 = sfence }
  0x50   : > { %s226_s28 = sld [smem:[#allocation3]]  ;;  %s492_s20 = sld [smem:[#allocation3 + $0x1]]  ;;  %v323_v0 = vlaneseq  ;;  %v723_v1 = vmov 1966171168   ;;  %v222_v3 = vld [vmem:[%s196_s4] sm:$0xff]  ;;  %v223_v4 = vld [vmem:[%s196_s4 + $0x8] sm:$0xff] }
  0x51   : > { %s497_s22 = sld [smem:[#allocation3 + $0x2]]  ;;  %s502_s21 = sld [smem:[#allocation3 + $0x3]]  ;;  %v321_v2 = vunpack.c.l.s4 %v723_v1  ;;  %v224_v5 = vld [vmem:[%s196_s4 + $0x10] sm:$0xff]  ;;  %v225_v6 = vld [vmem:[%s196_s4 + $0x18] sm:$0xff] }
  0x52   : > { %v324_v8 = vshrl.u32 %v323_v0, 7  ;;  %s310_s23 = sld [smem:[#allocation2]]  ;;  %s491_s27 = sshll.u32 %s886_s25, 3 }
  0x53   : > { %v322_v12 = vunpack.c.0.s8 %v321_v2  ;;  %s219_s5 = scalar_lea.vmem [#allocation8], %s491_s27  ;;  %s513_s7 = sshll.u32 %s711_s17, 7 }
  0x54   : > { %s384_s6 = sshll.u32 %s219_s5, 4  ;;  %s901_s12 = scalar_lea.hbm %s951_s3, %s513_s7  ;;  %s896_s6 = int_to_ptr.vmem [resolvable:$true] %s384_s6 }
  0x55   : > { %v325_v50 = vsub.s32 %v322_v12, %v324_v8  ;;  %s368_s13 = scalar_lea.sflag [#allocation5], %s886_s25  ;;  %s633_s1 = scalar_lea.vmem %s896_s6, 128 }
  0x56   : > { %v227_v7 = vstv %s226_s28  ;;  %v233_v14 = vstv %s492_s20  ;;  %p634_p8 = scmp.ne.s32.totalorder %s896_s6, %s633_s1  ;;  %p966_p0 = scmp.ne.s32.totalorder %s962_s8, 0 }
  0x57   : > { %v228_v9 = vmul.f32 %v227_v7, %v222_v3  ;;  %v229_v10 = vmul.f32 %v227_v7, %v223_v4  ;;  %v230_v11 = vmul.f32 %v227_v7, %v224_v5  ;;  %v231_v13 = vmul.f32 %v227_v7, %v225_v6  ;;  %s724_s17 = smov [#allocation8]  }
  0x58   : > { %v259_v15 = vstv %s497_s22  ;;  %v285_v16 = vstv %s502_s21  ;;  %v234_v17 = vmul.f32 %v233_v14, %v222_v3  ;;  %v235_v18 = vmul.f32 %v233_v14, %v223_v4  ;;  %p635_p2 = pnand %p634_p8, %p966_p0  ;;  %s637_s29 = sshll.u32 %s724_s17, 4  ;;  %s638_s29 = int_to_ptr.vmem [resolvable:$false] %s637_s29 }
  0x59   : > { %v236_v19 = vmul.f32 %v233_v14, %v224_v5  ;;  %v237_v20 = vmul.f32 %v233_v14, %v225_v6  ;;  %v260_v21 = vmul.f32 %v259_v15, %v222_v3  ;;  %v261_v22 = vmul.f32 %v259_v15, %v223_v4  ;;  %s639_s26 = scalar_lea.vmem %s638_s29, 256  ;;  %p640_p4 = scmp.lt.s32.totalorder %s896_s6, %s638_s29 }
  0x5a   : > { %v262_v23 = vmul.f32 %v259_v15, %v224_v5  ;;  %v263_v24 = vmul.f32 %v259_v15, %v225_v6  ;;  %v493_v25 = vrot.slane %v234_v17, 9  ;;  %v494_v26 = vrot.slane %v235_v18, 9  ;;  %p636_p5 = pneg %p635_p2  ;;  %p641_p9 = scmp.lt.s32.totalorder %s639_s26, %s633_s1 }
  0x5b   : > { %v495_v27 = vrot.slane %v236_v19, 9  ;;  %v496_v28 = vrot.slane %v237_v20, 9  ;;  %v498_v29 = vrot.slane %v260_v21, 10  ;;  %v499_v30 = vrot.slane %v261_v22, 10 }
  0x5c   : > { %v500_v31 = vrot.slane %v262_v23, 10  ;;  %v501_v32 = vrot.slane %v263_v24, 10  ;;  %v254_v33 = vadd.f32 %v493_v25, %v228_v9  ;;  %v255_v34 = vadd.f32 %v494_v26, %v229_v10  ;;  %p642_p13 = por %p641_p9, %p640_p4 }
  0x5d   : > { %v256_v35 = vadd.f32 %v495_v27, %v230_v11  ;;  %v257_v36 = vadd.f32 %v496_v28, %v231_v13  ;;  %v286_v37 = vmul.f32 %v285_v16, %v222_v3  ;;  %v287_v38 = vmul.f32 %v285_v16, %v223_v4 }
  0x5e   : > { %v288_v39 = vmul.f32 %v285_v16, %v224_v5  ;;  %v289_v40 = vmul.f32 %v285_v16, %v225_v6  ;;  %v280_v41 = vadd.f32 %v498_v29, %v254_v33  ;;  %v281_v42 = vadd.f32 %v499_v30, %v255_v34  ;;  %p643_p11 = pnand %p642_p13, %p636_p5 }
  0x5f   : > { %v282_v43 = vadd.f32 %v500_v31, %v256_v35  ;;  %v283_v44 = vadd.f32 %v501_v32, %v257_v36  ;;  %v503_v45 = vrot.slane %v286_v37, 11  ;;  %v504_v46 = vrot.slane %v287_v38, 11 }
  0x60   : > { %v505_v47 = vrot.slane %v288_v39, 11  ;;  %v506_v48 = vrot.slane %v289_v40, 11  ;;  %v311_v49 = vstv %s310_s23 }
  0x61   : > { %v306_v51 = vadd.f32 %v503_v45, %v280_v41  ;;  %v307_v52 = vadd.f32 %v504_v46, %v281_v42 }
  0x62   : > { %v308_v53 = vadd.f32 %v505_v47, %v282_v43  ;;  %v309_v54 = vadd.f32 %v506_v48, %v283_v44 }
  0x63   : > { %v312_v55 = vadd.f32 %v311_v49, %v306_v51  ;;  %v313_v56 = vadd.f32 %v311_v49, %v307_v52 }
  0x64   : > { %v314_v57 = vadd.f32 %v311_v49, %v308_v53  ;;  %v315_v58 = vadd.f32 %v311_v49, %v309_v54 }
  0x65   : > { %v326_v59 = vrot.slane %v312_v55, %v325_v50  ;;  %v333_v60 = vrot.slane %v313_v56, %v325_v50 }
  0x66   : > { %v340_v61 = vrot.slane %v314_v57, %v325_v50  ;;  %v347_v62 = vrot.slane %v315_v58, %v325_v50 }
  0x67   : > { %v348_v63 = vcombine.low %v326_v59, %v333_v60 }
  0x68   : > { %v349_v0 = vcombine.low %v340_v61, %v347_v62 }
  0x69   : > { %v356_v1 = vrot.slane %v348_v63, %v325_v50 }
  0x6a   : > { %v363_v2 = vrot.slane %v349_v0, %v325_v50 }
  0x6c   : > { %v364_v3 = vcombine.low %v356_v1, %v363_v2 }
  0x6e   : > { %366 = vst [vmem:[%s219_s5] sm:$0xff] %v364_v3 }
  0x6f   : > { %646 = shalt.err (!%p643_p11)
}
  0x70   : > { %s647_s25 = scalar_lea.hbm %s901_s12, 128  ;;  %s651_s20 = scalar_lea.hbm %s951_s3, 256 }
  0x71   : > { %p648_p3 = scmp.ne.s32.totalorder %s901_s12, %s647_s25  ;;  %p652_p6 = scmp.lt.u32.totalorder %s901_s12, %s951_s3 }
  0x72   : > { %p653_p12 = scmp.lt.u32.totalorder %s651_s20, %s647_s25  ;;  %p655_p8 = scmp.lt.u32.totalorder %s647_s25, %s901_s12 }
  0x73   : > { %p649_p7 = pnand %p648_p3, %p966_p0 }
  0x74   : > { %p654_p1 = por %p653_p12, %p652_p6 }
  0x75   : > { %p650_p10 = pneg %p649_p7 }
  0x76   : > { %p656_p2 = por %p655_p8, %p654_p1 }
  0x78   : > { %p657_p5 = pnand %p656_p2, %p650_p10 }
  0x7a   : > { %660 = shalt.err (!%p657_p5)
}
  0x7b   : > { %520 = dma.vmem_to_hbm [thread:$0]  (%p966_p0), %s896_s6, 128, %s901_s12, %s368_s13  }
  0x7c PF: > { %s396_s23 = sand.u32 1, %s699_s14   ;;  %p967_p4 = scmp.ne.s32.totalorder %s959_s24, 0 }
  0x7d   : > { %p968_p9 = scmp.ge.s32.totalorder %s719_s19, 2  ;;  %s397_s27 = scalar_lea.sflag [#allocation5], %s396_s23 }
  0x7f   : > { %p531_p13 = pnand %p968_p9, %p967_p4 }
  0x81   : > { %694 = dma.done.wait (!%p531_p13), %s397_s27, 128  }
  0x82   : > { %696 = vsyncadd (!%p531_p13), %s397_s27, 4294967168  ;;  %s21_s19 = sadd.s32 1, %s719_s19   ;;  %s969_s14 = smov %s703_s15 }
  0x83   : > { %p18_p11 = scmp.ge.s32.totalorder %s21_s19, 4   ;;  %s970_s15 = smov %s707_s16 }
  0x84   : > { %s971_s16 = smov %s840_s10  ;;  %s972_s17 = smov %s715_s18 }
  0x85   : > { %s973_s18 = smov %s975_s30  ;;  %20 = sbr.rel (!%p18_p11) target bundleno = 9 (0x9), region = 82 }
  0x8c   :  { %402 = vsyncpa [#allocation4], 1 }
  0x8d   :  { %404 = vsyncpa [#allocation4 + $0x1], 1 }
  0x8e   :  { %405 = vsyncpa [#allocation5], 1 }
  0x8f   :  { %407 = vsyncpa [#allocation5 + $0x1], 1 }
  0x90   :  { %408 = vsyncpa [#allocation6], 1 }
  0x91   :  { %410 = vsyncpa [#allocation6 + $0x1], 1 }

</bundles_post_ra>
